<compile_context>
chip_gen: v5e
topology: v5e:2x2
jax: 0.10.0
libtpu: 0.0.40
codegen_flags: <defaults>
</compile_context>

<pallas_src>
import functools

import jax
import jax.numpy as jnp
from jax.experimental import pallas as pl
from jax.experimental.pallas import tpu as pltpu


def _channel_attention_kernel(x_ref, w1_ref, w2_ref, out_ref,
                              sum_ref, max_ref, *, hw_total, hw_tile):
    # x_ref:   (B_TILE, C, HW_TILE) f32  -- streamed spatial tile
    # w1_ref:  (C, C//r) f32             -- pre-transposed: h = pooled @ w1
    # w2_ref:  (C//r, C) f32             -- pre-transposed: y = h @ w2
    # out_ref: (B_TILE, C) f32           -- resident across the HW axis
    # sum_ref/max_ref: (B_TILE, C) f32 scratch accumulators
    hw_idx = pl.program_id(1)

    @pl.when(hw_idx == 0)
    def _init():
        sum_ref[...] = jnp.zeros_like(sum_ref)
        max_ref[...] = jnp.full_like(max_ref, -jnp.inf)

    x = x_ref[...]  # single load; both reductions use it (fused avg/max pass)

    # Mask lanes past the true spatial extent (handles a partial last tile).
    col = jax.lax.broadcasted_iota(jnp.int32, x.shape, 2) + hw_idx * hw_tile
    valid = col < hw_total
    x_sum = jnp.where(valid, x, 0.0)
    x_max = jnp.where(valid, x, -jnp.inf)

    sum_ref[...] = sum_ref[...] + jnp.sum(x_sum, axis=-1)
    max_ref[...] = jnp.maximum(max_ref[...], jnp.max(x_max, axis=-1))

    @pl.when(hw_idx == pl.num_programs(1) - 1)
    def _finalize():
        b_tile = out_ref.shape[0]
        avg = sum_ref[...] * (1.0 / float(hw_total))  # true H*W, not padded
        mx = max_ref[...]
        # Stack avg & max -> one pass through the (tiny) FC weights on the MXU.
        pooled = jnp.concatenate([avg, mx], axis=0)            # (2*B_TILE, C)
        h = jnp.dot(pooled, w1_ref[...], preferred_element_type=jnp.float32)
        h = jnp.maximum(h, 0.0)                                # ReLU
        y = jnp.dot(h, w2_ref[...], preferred_element_type=jnp.float32)
        out = y[:b_tile] + y[b_tile:]
        out_ref[...] = jax.nn.sigmoid(out)


def channel_attention(x, w1, w2, *, b_tile=None, hw_tile=None):
    """x: (B, C, H, W) f32. w1: (C//r, C), w2: (C, C//r) [PyTorch Linear layout]."""
    B, C, H, W = x.shape
    HW = H * W
    x_flat = x.reshape(B, C, HW).astype(jnp.float32)
    # Pre-transpose PyTorch Linear weights so the kernel does plain v @ W.
    w1_t = jnp.transpose(w1).astype(jnp.float32)   # (C, C//r)
    w2_t = jnp.transpose(w2).astype(jnp.float32)   # (C//r, C)
    hidden = w1_t.shape[1]

    if b_tile is None:
        b_tile = min(B, 8)
    if hw_tile is None:
        if HW <= 1024:
            # Full-extent spatial block (allowed even if not a multiple of 128).
            hw_tile = HW
        else:
            # Lane-aligned tile, capped so one double-buffered x pair stays
            # well under v7x's 64 MiB VMEM (<= ~8 MiB per buffer).
            max_tile_bytes = 8 * 1024 * 1024
            cap = max(128, (max_tile_bytes // (b_tile * C * 4)) // 128 * 128)
            hw_tile = min(1024, cap)

    grid = (pl.cdiv(B, b_tile), pl.cdiv(HW, hw_tile))

    x_tile_bytes = b_tile * C * hw_tile * 4
    weight_bytes = (w1_t.size + w2_t.size) * 4
    scratch_bytes = 2 * b_tile * C * 4
    vmem_limit = int(min(
        64 * 1024 * 1024,
        2 * x_tile_bytes + 2 * weight_bytes + scratch_bytes + (8 << 20)))

    kernel = functools.partial(
        _channel_attention_kernel, hw_total=HW, hw_tile=hw_tile)

    out = pl.pallas_call(
        kernel,
        out_shape=jax.ShapeDtypeStruct((B, C), jnp.float32),
        grid_spec=pltpu.PrefetchScalarGridSpec(
            num_scalar_prefetch=0,
            grid=grid,
            in_specs=[
                pl.BlockSpec((b_tile, C, hw_tile), lambda b, hw: (b, 0, hw)),
                pl.BlockSpec((C, hidden), lambda b, hw: (0, 0)),
                pl.BlockSpec((hidden, C), lambda b, hw: (0, 0)),
            ],
            out_specs=pl.BlockSpec((b_tile, C), lambda b, hw: (b, 0)),
            scratch_shapes=[
                pltpu.VMEM((b_tile, C), jnp.float32),  # running sum
                pltpu.VMEM((b_tile, C), jnp.float32),  # running max
            ],
        ),
        compiler_params=pltpu.CompilerParams(
            dimension_semantics=("parallel", "arbitrary"),
            vmem_limit_bytes=vmem_limit,
        ),
    )(x_flat, w1_t, w2_t)

    return out.reshape(B, C, 1, 1)


def reference(x, w1, w2):
    """Pure-JAX reference matching the PyTorch forward."""
    B, C, _, _ = x.shape
    avg = jnp.mean(x, axis=(2, 3))
    mx = jnp.max(x, axis=(2, 3))

    def fc(v):
        return jnp.maximum(v @ w1.T, 0.0) @ w2.T

    return jax.nn.sigmoid(fc(avg) + fc(mx)).reshape(B, C, 1, 1)


if __name__ == "__main__":
    key = jax.random.PRNGKey(0)
    kx, k1, k2, kx2 = jax.random.split(key, 4)

    # Module config: channels=64, reduction_ratio=16 -> hidden = 4.
    B, C, H, W = 2, 64, 16, 16
    reduction_ratio = 16
    hidden = C // reduction_ratio

    x = jax.random.normal(kx, (B, C, H, W), dtype=jnp.float32)
    # PyTorch nn.Linear weight layouts: (out_features, in_features).
    w1 = jax.random.normal(k1, (hidden, C), dtype=jnp.float32) * 0.1
    w2 = jax.random.normal(k2, (C, hidden), dtype=jnp.float32) * 0.1

    out = jax.block_until_ready(channel_attention(x, w1, w2))
    ref = reference(x, w1, w2)
    assert out.shape == (B, C, 1, 1), out.shape
    assert jnp.allclose(out, ref, atol=1e-5, rtol=1e-5), float(
        jnp.max(jnp.abs(out - ref)))

    # Second check: larger, non-128-multiple spatial extent exercises the
    # multi-step HW accumulation path and the partial-tile masking.
    B2, H2, W2 = 3, 40, 33   # HW = 1320 -> two HW tiles (1024 + masked 296)
    x2 = jax.random.normal(kx2, (B2, C, H2, W2), dtype=jnp.float32)
    out2 = jax.block_until_ready(channel_attention(x2, w1, w2))
    ref2 = reference(x2, w1, w2)
    assert out2.shape == (B2, C, 1, 1), out2.shape
    assert jnp.allclose(out2, ref2, atol=1e-5, rtol=1e-5), float(
        jnp.max(jnp.abs(out2 - ref2)))

    print("KERNEL_OK")
</pallas_src>

<mosaic_0001>
module attributes {stable_mosaic.version = 11 : i64} {
  func.func @_channel_attention_kernel(%arg0: i32, %arg1: i32, %arg2: memref<2x64x256xf32, #tpu.memory_space<vmem>>, %arg3: memref<64x4xf32, #tpu.memory_space<vmem>>, %arg4: memref<4x64xf32, #tpu.memory_space<vmem>>, %arg5: memref<2x64xf32, #tpu.memory_space<vmem>>, %arg6: memref<2x64xf32, #tpu.memory_space<vmem>>, %arg7: memref<2x64xf32, #tpu.memory_space<vmem>>) attributes {dimension_semantics = [#tpu.dimension_semantics<parallel>, #tpu.dimension_semantics<arbitrary>], iteration_bounds = array<i64: 1, 1>, scalar_prefetch = 0 : i64, scratch_operands = 2 : i64, tpu.core_type = #tpu.core_type<tc>, window_params = [{transform_indices = @transform_0, window_bounds = array<i64: 2, 64, 256>}, {pipeline_mode = #tpu.pipeline_mode<synchronous>, transform_indices = @transform_1, window_bounds = array<i64: 64, 4>}, {pipeline_mode = #tpu.pipeline_mode<synchronous>, transform_indices = @transform_2, window_bounds = array<i64: 4, 64>}, {transform_indices = @transform_3, window_bounds = array<i64: 2, 64>}]} {
    %c0_i32 = arith.constant 0 : i32
    %0 = arith.cmpi eq, %arg1, %c0_i32 : i32
    %1 = arith.extui %0 : i1 to i32
    %c0_i32_0 = arith.constant 0 : i32
    %2 = arith.cmpi ne, %1, %c0_i32_0 : i32
    scf.if %2 {
      %cst_17 = arith.constant 0.000000e+00 : f32
      %25 = vector.broadcast %cst_17 : f32 to vector<2x64xf32>
      %c0_18 = arith.constant 0 : index
      %c0_19 = arith.constant 0 : index
      %26 = vector.load %arg6[%c0_18, %c0_19] : memref<2x64xf32, #tpu.memory_space<vmem>>, vector<2x64xf32>
      tpu.vector_store %arg6[%c0_18, %c0_19], %25 {strides = array<i32>} : memref<2x64xf32, #tpu.memory_space<vmem>>, vector<2x64xf32>,
      %cst_20 = arith.constant 0xFF800000 : f32
      %27 = vector.broadcast %cst_20 : f32 to vector<2x64xf32>
      %c0_21 = arith.constant 0 : index
      %c0_22 = arith.constant 0 : index
      %28 = vector.load %arg7[%c0_21, %c0_22] : memref<2x64xf32, #tpu.memory_space<vmem>>, vector<2x64xf32>
      tpu.vector_store %arg7[%c0_21, %c0_22], %27 {strides = array<i32>} : memref<2x64xf32, #tpu.memory_space<vmem>>, vector<2x64xf32>,
    } else {
    }
    %c0 = arith.constant 0 : index
    %c0_1 = arith.constant 0 : index
    %c0_2 = arith.constant 0 : index
    %3 = vector.load %arg2[%c0, %c0_1, %c0_2] : memref<2x64x256xf32, #tpu.memory_space<vmem>>, vector<2x64x256xf32>
    %4 = tpu.iota {dimensions = array<i32: 2>} : vector<2x64x256xi32>
    %c256_i32 = arith.constant 256 : i32
    %5 = arith.muli %arg1, %c256_i32 : i32
    %6 = vector.broadcast %5 : i32 to vector<2x64x256xi32>
    %7 = arith.addi %4, %6 : vector<2x64x256xi32>
    %c256_i32_3 = arith.constant 256 : i32
    %8 = vector.broadcast %c256_i32_3 : i32 to vector<2x64x256xi32>
    %9 = arith.cmpi slt, %7, %8 : vector<2x64x256xi32>
    %cst = arith.constant 0.000000e+00 : f32
    %10 = vector.broadcast %cst : f32 to vector<2x64x256xf32>
    %11 = arith.select %9, %3, %10 : vector<2x64x256xi1>, vector<2x64x256xf32>
    %cst_4 = arith.constant 0xFF800000 : f32
    %12 = vector.broadcast %cst_4 : f32 to vector<2x64x256xf32>
    %13 = arith.select %9, %3, %12 : vector<2x64x256xi1>, vector<2x64x256xf32>
    %c0_5 = arith.constant 0 : index
    %c0_6 = arith.constant 0 : index
    %14 = vector.load %arg6[%c0_5, %c0_6] : memref<2x64xf32, #tpu.memory_space<vmem>>, vector<2x64xf32>
    %cst_7 = arith.constant dense<0.000000e+00> : vector<2x64xf32>
    %15 = vector.multi_reduction <add>, %11, %cst_7 [2] : vector<2x64x256xf32> to vector<2x64xf32>
    %16 = arith.addf %14, %15 : vector<2x64xf32>
    %c0_8 = arith.constant 0 : index
    %c0_9 = arith.constant 0 : index
    %17 = vector.load %arg6[%c0_8, %c0_9] : memref<2x64xf32, #tpu.memory_space<vmem>>, vector<2x64xf32>
    tpu.vector_store %arg6[%c0_8, %c0_9], %16 {strides = array<i32>} : memref<2x64xf32, #tpu.memory_space<vmem>>, vector<2x64xf32>,
    %c0_10 = arith.constant 0 : index
    %c0_11 = arith.constant 0 : index
    %18 = vector.load %arg7[%c0_10, %c0_11] : memref<2x64xf32, #tpu.memory_space<vmem>>, vector<2x64xf32>
    %cst_12 = arith.constant dense<0xFF800000> : vector<2x64xf32>
    %19 = vector.multi_reduction <maximumf>, %13, %cst_12 [2] : vector<2x64x256xf32> to vector<2x64xf32>
    %20 = arith.maximumf %18, %19 : vector<2x64xf32>
    %c0_13 = arith.constant 0 : index
    %c0_14 = arith.constant 0 : index
    %21 = vector.load %arg7[%c0_13, %c0_14] : memref<2x64xf32, #tpu.memory_space<vmem>>, vector<2x64xf32>
    tpu.vector_store %arg7[%c0_13, %c0_14], %20 {strides = array<i32>} : memref<2x64xf32, #tpu.memory_space<vmem>>, vector<2x64xf32>,
    %c0_i32_15 = arith.constant 0 : i32
    %22 = arith.cmpi eq, %arg1, %c0_i32_15 : i32
    %23 = arith.extui %22 : i1 to i32
    %c0_i32_16 = arith.constant 0 : i32
    %24 = arith.cmpi ne, %23, %c0_i32_16 : i32
    scf.if %24 {
      %c0_17 = arith.constant 0 : index
      %c0_18 = arith.constant 0 : index
      %25 = vector.load %arg6[%c0_17, %c0_18] : memref<2x64xf32, #tpu.memory_space<vmem>>, vector<2x64xf32>
      %cst_19 = arith.constant 3.906250e-03 : f32
      %26 = vector.broadcast %cst_19 : f32 to vector<2x64xf32>
      %27 = arith.mulf %25, %26 : vector<2x64xf32>
      %c0_20 = arith.constant 0 : index
      %c0_21 = arith.constant 0 : index
      %28 = vector.load %arg7[%c0_20, %c0_21] : memref<2x64xf32, #tpu.memory_space<vmem>>, vector<2x64xf32>
      %29 = tpu.concatenate %27, %28 in 0 : vector<2x64xf32>, vector<2x64xf32> -> vector<4x64xf32>
      %c0_22 = arith.constant 0 : index
      %c0_23 = arith.constant 0 : index
      %30 = vector.load %arg3[%c0_22, %c0_23] : memref<64x4xf32, #tpu.memory_space<vmem>>, vector<64x4xf32>
      %cst_24 = arith.constant dense<0.000000e+00> : vector<4x4xf32>
      %31 = tpu.matmul %29, %30, %cst_24 {dimension_numbers = #tpu.dot_dimension_numbers<[1], [0], [0], [1], [0, 0, 1, 1], [], []>} : vector<4x64xf32>, vector<64x4xf32>, vector<4x4xf32> -> vector<4x4xf32>
      %cst_25 = arith.constant 0.000000e+00 : f32
      %32 = vector.broadcast %cst_25 : f32 to vector<4x4xf32>
      %33 = arith.maximumf %31, %32 : vector<4x4xf32>
      %c0_26 = arith.constant 0 : index
      %c0_27 = arith.constant 0 : index
      %34 = vector.load %arg4[%c0_26, %c0_27] : memref<4x64xf32, #tpu.memory_space<vmem>>, vector<4x64xf32>
      %cst_28 = arith.constant dense<0.000000e+00> : vector<4x64xf32>
      %35 = tpu.matmul %33, %34, %cst_28 {dimension_numbers = #tpu.dot_dimension_numbers<[1], [0], [0], [1], [0, 0, 1, 1], [], []>} : vector<4x4xf32>, vector<4x64xf32>, vector<4x64xf32> -> vector<4x64xf32>
      %36 = vector.extract_strided_slice %35 {offsets = [0, 0], sizes = [2, 64], strides = [1, 1]} : vector<4x64xf32> to vector<2x64xf32>
      %37 = vector.extract_strided_slice %35 {offsets = [2, 0], sizes = [2, 64], strides = [1, 1]} : vector<4x64xf32> to vector<2x64xf32>
      %38 = arith.addf %36, %37 : vector<2x64xf32>
      %39 = arith.negf %38 : vector<2x64xf32>
      %40 = math.exp %39 : vector<2x64xf32>
      %cst_29 = arith.constant 1.000000e+00 : f32
      %41 = vector.broadcast %cst_29 : f32 to vector<2x64xf32>
      %42 = arith.addf %41, %40 : vector<2x64xf32>
      %43 = arith.divf %41, %42 : vector<2x64xf32>
      %c0_30 = arith.constant 0 : index
      %c0_31 = arith.constant 0 : index
      %44 = vector.load %arg5[%c0_30, %c0_31] : memref<2x64xf32, #tpu.memory_space<vmem>>, vector<2x64xf32>
      tpu.vector_store %arg5[%c0_30, %c0_31], %43 {strides = array<i32>} : memref<2x64xf32, #tpu.memory_space<vmem>>, vector<2x64xf32>,
    } else {
    }
    return
  }
  func.func @transform_0(%arg0: i32, %arg1: i32) -> (i32, i32, i32) {
    %c0_i32 = arith.constant 0 : i32
    %c0_i32_0 = arith.constant 0 : i32
    return %arg0, %c0_i32, %arg1 : i32, i32, i32
  }
  func.func @transform_1(%arg0: i32, %arg1: i32) -> (i32, i32) {
    %c0_i32 = arith.constant 0 : i32
    %c0_i32_0 = arith.constant 0 : i32
    %c0_i32_1 = arith.constant 0 : i32
    return %c0_i32, %c0_i32_0 : i32, i32
  }
  func.func @transform_2(%arg0: i32, %arg1: i32) -> (i32, i32) {
    %c0_i32 = arith.constant 0 : i32
    %c0_i32_0 = arith.constant 0 : i32
    %c0_i32_1 = arith.constant 0 : i32
    return %c0_i32, %c0_i32_0 : i32, i32
  }
  func.func @transform_3(%arg0: i32, %arg1: i32) -> (i32, i32) {
    %c0_i32 = arith.constant 0 : i32
    %c0_i32_0 = arith.constant 0 : i32
    return %arg0, %c0_i32 : i32, i32
  }
}

</mosaic_0001>

<bundles_post_ra>
// kernel: tpu_custom_call.1
= control target key start
LH: loop header
LB: loop body
LE: loop exit
PB: predicated region body
PF: predicated region fallthrough
CT: control target
= control target key end

     0   :  { %8 = vsyncpa [#allocation5], 0  ;;  %s749_s0 = inlined_call_operand.hbm [shape: f32[2,64,256], index: 0, kind: input, shape index: {}]   ;;  %s750_s1 = inlined_call_operand.vmem [shape: f32[64,4], index: 1, kind: input, shape index: {}]   ;;  %s751_s2 = inlined_call_operand.vmem [shape: f32[4,64], index: 2, kind: input, shape index: {}]   ;;  %s752_s3 = inlined_call_operand.hbm [shape: f32[2,64], index: 3, kind: output, shape index: {}]  }
   0x1   :  { %9 = vsyncpa [#allocation6], 0  ;;  %s14_s14 = sshll.u32 %s749_s0, 4  ;;  %s537_s15 = smov [#allocation4]   ;;  %s15_s14 = int_to_ptr.hbm [resolvable:$true] %s14_s14 }
   0x2   :  { %s16_s16 = sshll.u32 %s537_s15, 4  ;;  %s538_s17 = smov 256   ;;  %s17_s16 = int_to_ptr.vmem [resolvable:$true] %s16_s16 }
   0x3   :  { %s539_s18 = smov 16  }
   0x4   :  { %22 = dma.hbm_to_vmem [thread:$0]  %s15_s14, 4096, %s17_s16, [#allocation5], %s538_s17, %s538_s17, %s539_s18  }
   0x5   :  { %533 = dma.done.wait [#allocation5], 4096  }
   0x6   :  { %534 = vsyncadd [#allocation5], 4294963200  ;;  %v54_v0 = vld [vmem:[#allocation4 + $0x80] sm:$0xff]  ;;  %v55_v1 = vld [vmem:[#allocation4 + $0x88] sm:$0xff]  ;;  %vm211_vm0 = vcmask 130112   ;;  %vm35_vm1 = vcmask 517120  }
   0x7   :  { %v38_v2 = vld [vmem:[#allocation4] sm:$0xff]  ;;  %v168_v3 = vadd.f32 %v55_v1, %v54_v0  ;;  %v39_v4 = vld [vmem:[#allocation4 + $0x8] sm:$0xff]  ;;  %v56_v7 = vld [vmem:[#allocation4 + $0x90] sm:$0xff]  ;;  %v283_v18 = vmax.f32 %v54_v0, %v55_v1  ;;  %v70_v0 = vlaneseq  ;;  %vm215_vm2 = vcmask 195712   ;;  %s461_s11 = sshll.u32 %s752_s3, 4  ;;  %s462_s11 = int_to_ptr.hbm [resolvable:$true] %s461_s11 }
   0x8   :  { %v259_v5 = vmax.f32 %v38_v2, %v39_v4  ;;  %v144_v6 = vadd.f32 %v39_v4, %v38_v2  ;;  %v57_v8 = vld [vmem:[#allocation4 + $0x98] sm:$0xff]  ;;  %v40_v9 = vld [vmem:[#allocation4 + $0x10] sm:$0xff]  ;;  %v42_v14 = vld [vmem:[#allocation4 + $0x20] sm:$0xff]  ;;  %vm219_vm3 = vcmask 261312   ;;  %vm223_vm4 = vcmask 326912  }
   0x9   :  { %169 = vadd.xlane.f32.xlu1 %v168_v3  ;;  %v41_v10 = vld [vmem:[#allocation4 + $0x18] sm:$0xff]  ;;  %v171_v11 = vadd.f32 %v57_v8, %v56_v7  ;;  %v43_v15 = vld [vmem:[#allocation4 + $0x28] sm:$0xff]  ;;  %v286_v16 = vmax.f32 %v56_v7, %v57_v8  ;;  %v58_v19 = vld [vmem:[#allocation4 + $0xa0] sm:$0xff]  ;;  %v570_v4 = vand.u32 127, %v70_v0  ;;  %vm227_vm5 = vcmask 392512  }
   0xa   :  { %260 = vmax.xlane.f32.xlu2 %v259_v5  ;;  %145 = vadd.xlane.f32.xlu0 %v144_v6  ;;  %v262_v12 = vmax.f32 %v40_v9, %v41_v10  ;;  %v147_v13 = vadd.f32 %v41_v10, %v40_v9  ;;  %v150_v17 = vadd.f32 %v43_v15, %v42_v14  ;;  %v59_v20 = vld [vmem:[#allocation4 + $0xa8] sm:$0xff]  ;;  %v60_v24 = vld [vmem:[#allocation4 + $0xb0] sm:$0xff]  ;;  %v61_v25 = vld [vmem:[#allocation4 + $0xb8] sm:$0xff]  ;;  %vm231_vm6 = vcmask 458112  }
   0xb   :  { %v265_v21 = vmax.f32 %v42_v14, %v43_v15  ;;  %v289_v22 = vmax.f32 %v58_v19, %v59_v20  ;;  %v174_v23 = vadd.f32 %v59_v20, %v58_v19  ;;  %v44_v26 = vld [vmem:[#allocation4 + $0x30] sm:$0xff]  ;;  %v45_v27 = vld [vmem:[#allocation4 + $0x38] sm:$0xff]  ;;  %v177_v28 = vadd.f32 %v61_v25, %v60_v24  ;;  %v46_v31 = vld [vmem:[#allocation4 + $0x40] sm:$0xff] }
   0xc   :  { %v268_v29 = vmax.f32 %v44_v26, %v45_v27  ;;  %v153_v30 = vadd.f32 %v45_v27, %v44_v26  ;;  %v47_v32 = vld [vmem:[#allocation4 + $0x48] sm:$0xff]  ;;  %v62_v33 = vld [vmem:[#allocation4 + $0xc0] sm:$0xff]  ;;  %v292_v37 = vmax.f32 %v60_v24, %v61_v25  ;;  %v48_v38 = vld [vmem:[#allocation4 + $0x50] sm:$0xff]  ;;  %v573_v5 = vadd.s32 4294967288, %v570_v4 }
   0xd   :  { %v63_v34 = vld [vmem:[#allocation4 + $0xc8] sm:$0xff]  ;;  %v156_v35 = vadd.f32 %v47_v32, %v46_v31  ;;  %v49_v39 = vld [vmem:[#allocation4 + $0x58] sm:$0xff]  ;;  %v271_v42 = vmax.f32 %v46_v31, %v47_v32  ;;  %v64_v43 = vld [vmem:[#allocation4 + $0xd0] sm:$0xff]  ;;  %v541_v25 = vmov -inf   ;;  %vm235_vm7 = vcmask 523712  }
   0xe   :  { %v180_v36 = vadd.f32 %v63_v34, %v62_v33  ;;  %v295_v40 = vmax.f32 %v62_v33, %v63_v34  ;;  %v159_v41 = vadd.f32 %v49_v39, %v48_v38  ;;  %v65_v44 = vld [vmem:[#allocation4 + $0xd8] sm:$0xff]  ;;  %v274_v45 = vmax.f32 %v48_v38, %v49_v39  ;;  %v66_v48 = vld [vmem:[#allocation4 + $0xe0] sm:$0xff]  ;;  %v67_v49 = vld [vmem:[#allocation4 + $0xe8] sm:$0xff]  ;;  %37 = vst.msk [vmem:[#allocation3] sm:$0x3] %vm35_vm1, %v541_v25 }
   0xf   :  { %v298_v46 = vmax.f32 %v64_v43, %v65_v44  ;;  %v183_v47 = vadd.f32 %v65_v44, %v64_v43  ;;  %v50_v50 = vld [vmem:[#allocation4 + $0x60] sm:$0xff]  ;;  %v51_v51 = vld [vmem:[#allocation4 + $0x68] sm:$0xff]  ;;  %v186_v52 = vadd.f32 %v67_v49, %v66_v48  ;;  %v52_v55 = vld [vmem:[#allocation4 + $0x70] sm:$0xff]  ;;  %v301_v61 = vmax.f32 %v66_v48, %v67_v49 }
  0x10   :  { %v277_v53 = vmax.f32 %v50_v50, %v51_v51  ;;  %v162_v54 = vadd.f32 %v51_v51, %v50_v50  ;;  %v53_v56 = vld [vmem:[#allocation4 + $0x78] sm:$0xff]  ;;  %v68_v57 = vld [vmem:[#allocation4 + $0xf0] sm:$0xff]  ;;  %v373_v31 = vld [vmem:[%s750_s1 + $0x28] sm:$0xff]  ;;  %v642_v39 = vadd.s32 4294967280, %v570_v4  ;;  %v655_v44 = vadd.s32 4294967264, %v570_v4 }
  0x11   :  { %172 = vadd.xlane.f32.xlu1 %v171_v11  ;;  %v69_v58 = vld [vmem:[#allocation4 + $0xf8] sm:$0xff]  ;;  %v165_v59 = vadd.f32 %v53_v56, %v52_v55  ;;  %v280_v63 = vmax.f32 %v52_v55, %v53_v56  ;;  %v369_v38 = vld [vmem:[%s750_s1 + $0x8] sm:$0xff]  ;;  %vm252_vm8 = vcmask 1041409   ;;  %vm366_vm9 = vcmask 1041408  }
  0x12   :  { %263 = vmax.xlane.f32.xlu2 %v262_v12  ;;  %148 = vadd.xlane.f32.xlu0 %v147_v13  ;;  %v189_v60 = vadd.f32 %v69_v58, %v68_v57  ;;  %v304_v62 = vmax.f32 %v68_v57, %v69_v58  ;;  %v372_v33 = vld [vmem:[%s750_s1 + $0x20] sm:$0xff]  ;;  %vm376_vm10 = vcmask 523264   ;;  %vm406_vm11 = vcmask 1043456  }
  0x13   :  { %vm402_vm12 = vcmask 31744  }
  0x19   :  { %287 = vmax.xlane.f32.xlu1 %v286_v16 }
  0x1a   :  { %151 = vadd.xlane.f32.xlu2 %v150_v17  ;;  %284 = vmax.xlane.f32.xlu0 %v283_v18 }
  0x21   :  { %266 = vmax.xlane.f32.xlu1 %v265_v21  ;;  %v540_v21 = vmov 0.0  }
  0x22   :  { %290 = vmax.xlane.f32.xlu2 %v289_v22  ;;  %175 = vadd.xlane.f32.xlu0 %v174_v23  ;;  %36 = vst.msk [vmem:[#allocation2] sm:$0x3] %vm35_vm1, %v540_v21 }
  0x29   :  { %178 = vadd.xlane.f32.xlu1 %v177_v28 }
  0x2a   :  { %269 = vmax.xlane.f32.xlu2 %v268_v29  ;;  %154 = vadd.xlane.f32.xlu0 %v153_v30  ;;  %v375_v29 = vld [vmem:[%s750_s1 + $0x38] sm:$0xff]  ;;  %v374_v30 = vld [vmem:[%s750_s1 + $0x30] sm:$0xff] }
  0x2b   :  { %388 = vmatpush.msra.mxu0 %v375_v29 }
  0x2d   :  { %389 = vmatpush.msra.mxu0 %v374_v30 }
  0x2f   :  { %390 = vmatpush.msra.mxu0 %v373_v31 }
  0x31   :  { %157 = vadd.xlane.f32.xlu1 %v156_v35  ;;  %391 = vmatpush.msra.mxu0 %v372_v33 }
  0x32   :  { %181 = vadd.xlane.f32.xlu2 %v180_v36  ;;  %293 = vmax.xlane.f32.xlu0 %v292_v37  ;;  %v371_v36 = vld [vmem:[%s750_s1 + $0x18] sm:$0xff]  ;;  %v370_v37 = vld [vmem:[%s750_s1 + $0x10] sm:$0xff] }
  0x33   :  { %392 = vmatpush.msra.mxu0 %v371_v36 }
  0x35   :  { %393 = vmatpush.msra.mxu0 %v370_v37 }
  0x37   :  { %394 = vmatpush.msra.mxu0 %v369_v38 }
  0x39   :  { %296 = vmax.xlane.f32.xlu1 %v295_v40  ;;  %v645_v40 = vadd.s32 4294967272, %v570_v4 }
  0x3a   :  { %160 = vadd.xlane.f32.xlu2 %v159_v41  ;;  %272 = vmax.xlane.f32.xlu0 %v271_v42  ;;  %v368_v41 = vld [vmem:[%s750_s1] sm:$0xff] }
  0x3b   :  { %395 = vmatpush.msra.mxu0 %v368_v41 }
  0x41   :  { %275 = vmax.xlane.f32.xlu1 %v274_v45 }
  0x42   :  { %299 = vmax.xlane.f32.xlu2 %v298_v46  ;;  %184 = vadd.xlane.f32.xlu0 %v183_v47  ;;  %v658_v46 = vadd.s32 4294967256, %v570_v4 }
  0x49   :  { %187 = vadd.xlane.f32.xlu1 %v186_v52  ;;  %v669_v52 = vadd.s32 4294967248, %v570_v4 }
  0x4a   :  { %278 = vmax.xlane.f32.xlu2 %v277_v53  ;;  %163 = vadd.xlane.f32.xlu0 %v162_v54 }
  0x51   :  { %166 = vadd.xlane.f32.xlu1 %v165_v59 }
  0x52   :  { %190 = vadd.xlane.f32.xlu2 %v189_v60  ;;  %302 = vmax.xlane.f32.xlu0 %v301_v61 }
  0x59   :  { %305 = vmax.xlane.f32.xlu1 %v304_v62  ;;  %v233_v62 = vadd.s32 4294967240, %v570_v4 }
  0x5a   :  { %281 = vmax.xlane.f32.xlu0 %v280_v63 }
  0x7c   :  { %v566_v1 = vpop.xlane.xlu1 %169 }
  0x7d   :  { %v261_v2 = vpop.xlane.xlu2 %260  ;;  %v568_v3 = vpop.xlane.xlu0 %145  ;;  %v237_v49 = vperm.slane %v566_v1, %v570_v4 }
  0x7e   :  { %v323_v6 = vperm.slane %v261_v2, %v570_v4  ;;  %v208_v50 = vperm.slane %v568_v3, %v570_v4 }
  0x84   :  { %v576_v7 = vpop.xlane.xlu1 %172 }
  0x85   :  { %v264_v8 = vpop.xlane.xlu2 %263  ;;  %v578_v9 = vpop.xlane.xlu0 %148  ;;  %v238_v42 = vperm.slane %v576_v7, %v573_v5 }
  0x86   :  { %v324_v10 = vperm.slane %v264_v8, %v573_v5  ;;  %v210_v43 = vperm.slane %v578_v9, %v573_v5 }
  0x87   :  { %v239_v55 = vsel %vm211_vm0, %v238_v42, %v237_v49  ;;  %v258_v49 = vld [vmem:[#allocation3] sm:$0x3] }
  0x88   :  { %v582_v11 = vsel %vm211_vm0, %v324_v10, %v323_v6  ;;  %v212_v56 = vsel %vm211_vm0, %v210_v43, %v208_v50 }
  0x8c   :  { %v584_v12 = vpop.xlane.xlu1 %287 }
  0x8d   :  { %v586_v13 = vpop.xlane.xlu2 %151  ;;  %v588_v14 = vpop.xlane.xlu0 %284  ;;  %v339_v59 = vperm.slane %v584_v12, %v573_v5 }
  0x8e   :  { %v214_v51 = vperm.slane %v586_v13, %v642_v39  ;;  %v338_v6 = vperm.slane %v588_v14, %v570_v4 }
  0x90   :  { %v216_v63 = vsel %vm215_vm2, %v214_v51, %v212_v56  ;;  %v340_v33 = vsel %vm211_vm0, %v339_v59, %v338_v6 }
  0x94   :  { %v590_v15 = vpop.xlane.xlu1 %266 }
  0x95   :  { %v592_v16 = vpop.xlane.xlu2 %290  ;;  %v594_v17 = vpop.xlane.xlu0 %175 }
  0x96   :  { %v240_v53 = vperm.slane %v594_v17, %v642_v39  ;;  %v341_v10 = vperm.slane %v592_v16, %v642_v39 }
  0x98   :  { %v241_v2 = vsel %vm215_vm2, %v240_v53, %v239_v55  ;;  %v342_v36 = vsel %vm215_vm2, %v341_v10, %v340_v33 }
  0x9c   :  { %v596_v18 = vpop.xlane.xlu1 %178 }
  0x9d   :  { %v598_v19 = vpop.xlane.xlu2 %269  ;;  %v600_v20 = vpop.xlane.xlu0 %154  ;;  %v242_v57 = vperm.slane %v596_v18, %v645_v40 }
  0x9e   :  { %v218_v54 = vperm.slane %v600_v20, %v645_v40  ;;  %v328_v29 = vperm.slane %v598_v19, %v645_v40 }
  0x9f   :  { %v243_v7 = vsel %vm219_vm3, %v242_v57, %v241_v2 }
  0xa0   :  { %v220_v3 = vsel %vm219_vm3, %v218_v54, %v216_v63 }
  0xa4   :  { %v603_v22 = vpop.xlane.xlu1 %157 }
  0xa5   :  { %v605_v23 = vpop.xlane.xlu2 %181  ;;  %v607_v24 = vpop.xlane.xlu0 %293  ;;  %v222_v58 = vperm.slane %v603_v22, %v655_v44  ;;  %v326_v22 = vperm.slane %v590_v15, %v642_v39 }
  0xa6   :  { %v244_v60 = vperm.slane %v605_v23, %v655_v44  ;;  %v343_v23 = vperm.slane %v607_v24, %v645_v40 }
  0xa7   :  { %v224_v8 = vsel %vm223_vm4, %v222_v58, %v220_v3  ;;  %v327_v38 = vsel %vm215_vm2, %v326_v22, %v582_v11  ;;  %v401_v58 = vld [vmem:[%s751_s2] sm:$0xf]  ;;  %s542_s2 = smov [#allocation7]  }
  0xa8   :  { %v245_v12 = vsel %vm223_vm4, %v244_v60, %v243_v7  ;;  %v344_v39 = vsel %vm219_vm3, %v343_v23, %v342_v36  ;;  %472 = vmatpush.msk.msra.mxu1 %vm406_vm11, %v401_v58  ;;  %s459_s8 = sshll.u32 %s542_s2, 4  ;;  %s460_s8 = int_to_ptr.vmem [resolvable:$true] %s459_s8 }
  0xac   :  { %v610_v26 = vpop.xlane.xlu1 %296 }
  0xad   :  { %v612_v27 = vpop.xlane.xlu2 %160  ;;  %v614_v28 = vpop.xlane.xlu0 %272  ;;  %v345_v30 = vperm.slane %v610_v26, %v655_v44 }
  0xae   :  { %v226_v61 = vperm.slane %v612_v27, %v658_v46  ;;  %v143_v27 = vld [vmem:[#allocation2] sm:$0x3]  ;;  %v330_v15 = vperm.slane %v614_v28, %v655_v44 }
  0xaf   :  { %v346_v40 = vsel %vm223_vm4, %v345_v30, %v344_v39 }
  0xb0   :  { %v228_v13 = vsel %vm227_vm5, %v226_v61, %v224_v8 }
  0xb4   :  { %v625_v32 = vpop.xlane.xlu1 %275 }
  0xb5   :  { %v630_v34 = vpop.xlane.xlu2 %299  ;;  %v185_v35 = vpop.xlane.xlu0 %184  ;;  %v332_v19 = vperm.slane %v625_v32, %v658_v46 }
  0xb6   :  { %v246_v0 = vperm.slane %v185_v35, %v658_v46  ;;  %v347_v24 = vperm.slane %v630_v34, %v658_v46  ;;  %v329_v34 = vsel %vm219_vm3, %v328_v29, %v327_v38 }
  0xb7   :  { %v331_v32 = vsel %vm223_vm4, %v330_v15, %v329_v34 }
  0xb8   :  { %v247_v21 = vsel %vm227_vm5, %v246_v0, %v245_v12  ;;  %v348_v42 = vsel %vm227_vm5, %v347_v24, %v346_v40  ;;  %v333_v11 = vsel %vm227_vm5, %v332_v19, %v331_v32 }
  0xbc   :  { %v188_v45 = vpop.xlane.xlu1 %187 }
  0xbd   :  { %v660_v47 = vpop.xlane.xlu2 %278  ;;  %v164_v48 = vpop.xlane.xlu0 %163  ;;  %v248_v5 = vperm.slane %v188_v45, %v669_v52 }
  0xbe   :  { %v230_v1 = vperm.slane %v164_v48, %v669_v52  ;;  %v334_v28 = vperm.slane %v660_v47, %v669_v52 }
  0xbf   :  { %v249_v16 = vsel %vm231_vm6, %v248_v5, %v247_v21 }
  0xc0   :  { %v232_v4 = vsel %vm231_vm6, %v230_v1, %v228_v13  ;;  %v335_v47 = vsel %vm231_vm6, %v334_v28, %v333_v11 }
  0xc4   :  { %v167_v9 = vpop.xlane.xlu1 %166 }
  0xc5   :  { %v234_v17 = vperm.slane %v167_v9, %v233_v62  ;;  %v191_v18 = vpop.xlane.xlu2 %190  ;;  %v303_v20 = vpop.xlane.xlu0 %302 }
  0xc6   :  { %v250_v14 = vperm.slane %v191_v18, %v233_v62  ;;  %v349_v26 = vperm.slane %v303_v20, %v669_v52 }
  0xc7   :  { %v236_v25 = vsel %vm235_vm7, %v234_v17, %v232_v4 }
  0xc8   :  { %v251_v31 = vsel %vm235_vm7, %v250_v14, %v249_v16  ;;  %v350_v45 = vsel %vm231_vm6, %v349_v26, %v348_v42 }
  0xc9   :  { %v253_v35 = vsel %vm252_vm8, %v251_v31, %v236_v25 }
  0xca   :  { %v255_v37 = vadd.f32 %v253_v35, %v143_v27 }
  0xcc   :  { %257 = vst.msk [vmem:[#allocation2] sm:$0x3] %vm35_vm1, %v255_v37  ;;  %v306_v41 = vpop.xlane.xlu1 %305 }
  0xcd   :  { %v351_v43 = vperm.slane %v306_v41, %v233_v62  ;;  %v282_v44 = vpop.xlane.xlu0 %281 }
  0xce   :  { %v336_v46 = vperm.slane %v282_v44, %v233_v62 }
  0xcf   :  { %v352_v48 = vsel %vm235_vm7, %v351_v43, %v350_v45 }
  0xd0   :  { %v337_v50 = vsel %vm235_vm7, %v336_v46, %v335_v47 }
  0xd1   :  { %v353_v51 = vsel %vm252_vm8, %v352_v48, %v337_v50 }
  0xd2   :  { %v355_v52 = vmax.f32 %v258_v49, %v353_v51 }
  0xd3   :  { %v360_v53 = vld [vmem:[#allocation2] sm:$0x3] }
  0xd4   :  { %356 = vst.msk [vmem:[#allocation3] sm:$0x3] %vm35_vm1, %v355_v52  ;;  %v361_v55 = vmul.f32 0.00390625, %v360_v53 }
  0xdb   :  { %v362_v54 = vld [vmem:[#allocation3] sm:$0x3] }
  0xdc   :  { %v364_v56 = vrot.slane %v362_v54, 6 }
  0xde   :  { %v367_v57 = vsel %vm366_vm9, %v361_v55, %v364_v56 }
  0xdf   :  { %471 = vmatmul.msk.f32.vlgmr.msra.gmra.mxu0 %vm376_vm10, %v367_v57 }
 0x15c   :  { %v397_v59 = vpop.f32.mrf.mxu0 }
 0x15d   :  { %v400_v60 = vmax.f32 %v397_v59, 0.0 }
 0x15f   :  { %473 = vmatmul.msk.f32.vlgmr.msra.gmra.mxu1 %vm402_vm12, %v400_v60 }
 0x1dc   :  { %v427_v61 = vpop.f32.mrf.mxu1 }
 0x1dd   :  { %v431_v62 = vrot.slane %v427_v61, 2 }
 0x1df   :  { %v433_v63 = vadd.f32 %v431_v62, %v427_v61 }
 0x1e1   :  { %v474_v0 = vmul.f32 -1.442695, %v433_v63 }
 0x1e3   :  { %481 = vpow2.f32 %v474_v0 }
 0x1e9   :  { %v482_v1 = vpop.eup %481 }
 0x1ea   :  { %v437_v2 = vadd.f32 1.0, %v482_v1 }
 0x1ec   :  { %483 = vrcp.f32 %v437_v2  ;;  %v449_v7 = vand.u32 2147483648, %v437_v2  ;;  %v447_v9 = vand.u32 2147483647, %v437_v2  ;;  %vm443_vm14 = vweird.f32 %v437_v2 }
 0x1ee   :  { %v450_v12 = vor.u32 1.1754944e-38, %v449_v7  ;;  %vm448_vm0 = vcmp.eq.f32.partialorder %v447_v9, 8.507059e+37 }
 0x1f2   :  { %v484_v3 = vpop.eup %483 }
 0x1f3   :  { %v439_v5 = vmul.f32 %v484_v3, %v437_v2  ;;  %vm444_vm13 = vweird.f32 %v484_v3 }
 0x1f4   :  { %vm445_vm15 = vmor %vm443_vm14, %vm444_vm13 }
 0x1f5   :  { %v440_v6 = vsub.f32 1.0, %v439_v5 }
 0x1f7   :  { %v441_v8 = vmul.f32 %v484_v3, %v440_v6 }
 0x1f9   :  { %v442_v10 = vadd.f32 %v484_v3, %v441_v8 }
 0x1fb   :  { %v446_v13 = vsel %vm445_vm15, %v484_v3, %v442_v10 }
 0x1fc   :  { %v451_v17 = vsel %vm448_vm0, %v450_v12, %v446_v13 }
 0x1fd   :  { %453 = vst.msk [vmem:[#allocation7] sm:$0x3] %vm35_vm1, %v451_v17 }
 0x1fe   :  { %464 = dma.vmem_to_hbm [thread:$0]  %s460_s8, 32, %s462_s11, [#allocation6]  }
 0x1ff   :  { %535 = dma.done.wait [#allocation6], 32  }
 0x200   :  { %536 = vsyncadd [#allocation6], 4294967264 }
 0x201   :  { %469 = vsyncpa [#allocation5], 1 }
 0x202   :  { %470 = vsyncpa [#allocation6], 1 }

</bundles_post_ra>
